<compile_context>
chip_gen: v5e
topology: v5e:2x2
jax: 0.10.0
libtpu: 0.0.40
codegen_flags: <defaults>
</compile_context>

<pallas_src>
import functools

import jax
import jax.numpy as jnp
from jax.experimental import pallas as pl
from jax.experimental.pallas import tpu as pltpu

LARGE_NUM = 1.0e9  # only used by the plain-JAX reference


def _ial_loss_kernel(si_ref, sj_ref, ti_ref, tj_ref,          # (TM, D) LHS slabs
                     sjt_ref, sit_ref, tjt_ref, tit_ref,      # (D, Bp) pre-transposed RHS
                     out_ref,                                  # (1, 1) f32 result
                     lp_ref, lq_ref, ab_ref, suma_ref,         # accumulators
                     *, inv_tau, alpha, zoom, batch, tile_m):
    i = pl.program_id(0)
    nt = pl.num_programs(0)
    bp = sjt_ref.shape[1]
    f32 = jnp.float32
    # Post-normalization logits are |cos| * (1/tau) <= inv_tau, so a constant
    # shift replaces the online running-max machinery: exp(x - inv_tau) in (0,1].
    shift = f32(inv_tau)

    @pl.when(i == 0)
    def _init():
        lp_ref[...] = jnp.zeros_like(lp_ref)
        lq_ref[...] = jnp.zeros_like(lq_ref)
        ab_ref[...] = jnp.zeros_like(ab_ref)
        suma_ref[...] = jnp.zeros_like(suma_ref)

    g0 = i * tile_m
    rows = g0 + jax.lax.broadcasted_iota(jnp.int32, (tile_m, bp), 0)
    cols = jax.lax.broadcasted_iota(jnp.int32, (tile_m, bp), 1)
    diag = rows == cols
    if batch < bp:
        pad = (rows >= batch) | (cols >= batch)
        cross_mask = pad            # ab block: only padding masked
        self_mask = pad | diag      # aa / bb blocks: padding + diagonal
    else:
        cross_mask = None
        self_mask = diag

    def mm(lhs_ref, rhs_ref):       # (TM, D) @ (D, Bp) -> (TM, Bp), f32 accumulate
        return jnp.dot(lhs_ref[...], rhs_ref[...], preferred_element_type=f32)

    def masked_exp(x, mask):
        e = jnp.exp(x - shift)
        return e if mask is None else jnp.where(mask, f32(0.0), e)

    # ---- "ab" block (feeds loss_a rows AND loss_b columns: p_ba = p_ab.T) ----
    a_p = mm(si_ref, sjt_ref)
    a_q = mm(ti_ref, tjt_ref)
    d_a = a_q - a_p
    ep = masked_exp(a_p, cross_mask)
    eq = masked_exp(a_q, cross_mask)
    eqd = eq * d_a
    zp_row = jnp.sum(ep, axis=1, keepdims=True)
    zq_row = jnp.sum(eq, axis=1, keepdims=True)
    num_row = jnp.sum(eqd, axis=1, keepdims=True)
    lp_col = jnp.sum(ep, axis=0, keepdims=True)
    lq_col = jnp.sum(eq, axis=0, keepdims=True)
    ab_col = jnp.sum(eqd, axis=0, keepdims=True)

    # ---- "aa" block (loss_a rows only) ----------------------------------------
    s_p = mm(si_ref, sit_ref)
    s_q = mm(ti_ref, tit_ref)
    d_s = s_q - s_p
    ep = masked_exp(s_p, self_mask)
    eq = masked_exp(s_q, self_mask)
    zp_row = zp_row + jnp.sum(ep, axis=1, keepdims=True)
    zq_row = zq_row + jnp.sum(eq, axis=1, keepdims=True)
    num_row = num_row + jnp.sum(eq * d_s, axis=1, keepdims=True)

    # ---- "bb" block (loss_b columns only; p_bb / q_bb are symmetric) -----------
    b_p = mm(sj_ref, sjt_ref)
    b_q = mm(tj_ref, tjt_ref)
    d_b = b_q - b_p
    ep = masked_exp(b_p, self_mask)
    eq = masked_exp(b_q, self_mask)
    eqd = eq * d_b
    lp_col = lp_col + jnp.sum(ep, axis=0, keepdims=True)
    lq_col = lq_col + jnp.sum(eq, axis=0, keepdims=True)
    ab_col = ab_col + jnp.sum(eqd, axis=0, keepdims=True)

    # ---- loss_a: this slab's rows have their full 2*Bp logits this step --------
    # KL row = sum_j softmax_q*(q - p) + lse_p - lse_q (constant shift cancels).
    kl_rows_a = num_row / zq_row + (jnp.log(zp_row) - jnp.log(zq_row))
    if batch < bp:
        row_idx = g0 + jax.lax.broadcasted_iota(jnp.int32, (tile_m, 1), 0)
        kl_rows_a = jnp.where(row_idx >= batch, f32(0.0), kl_rows_a)
    suma_ref[...] += jnp.sum(kl_rows_a, keepdims=True)

    # ---- loss_b: accumulate column statistics across slabs ---------------------
    lp_ref[...] += lp_col
    lq_ref[...] += lq_col
    ab_ref[...] += ab_col

    @pl.when(i == nt - 1)
    def _finalize():
        lq = lq_ref[...]
        kl_rows_b = ab_ref[...] / lq + (jnp.log(lp_ref[...]) - jnp.log(lq))
        if batch < bp:
            col_idx = jax.lax.broadcasted_iota(jnp.int32, (1, bp), 1)
            kl_rows_b = jnp.where(col_idx >= batch, f32(0.0), kl_rows_b)
        sum_b = jnp.sum(kl_rows_b, keepdims=True)
        inv_cnt = 1.0 / (2.0 * batch * batch)   # .mean() over B x 2B elements
        out_ref[...] = (zoom * (alpha * suma_ref[...] + (1.0 - alpha) * sum_b)
                        * inv_cnt).astype(out_ref.dtype)


def _round_up(x, m):
    return (x + m - 1) // m * m


def ial_loss_pallas(src_emb, tar_emb, train_links, *,
                    tau=0.05, ab_weight=0.5, zoom=0.1,
                    inversion=False, reduction='mean', row_tile=128):
    # Only the module defaults are implemented; fail loudly otherwise.
    assert not inversion, "TODO(synk): inversion=True branch not implemented"
    assert reduction == 'mean', "TODO(synk): reduction='sum' branch not implemented"
    # 'detach' only affects gradients; the forward value is unchanged.

    # Gather the paired embeddings (row-wise L2 norm commutes with the gather).
    src_zis = src_emb[train_links[:, 0]]
    src_zjs = src_emb[train_links[:, 1]]
    tar_zis = tar_emb[train_links[:, 0]]
    tar_zjs = tar_emb[train_links[:, 1]]
    batch, d = src_zis.shape
    assert row_tile % 8 == 0

    # NOTE: on v6e raising row_tile to 256 better fills the 256x256 MXU when
    # the VMEM budget allows; on v5e (128x128 MXU) and v7x (64 MiB VMEM)
    # keep 128.
    tm = min(row_tile, _round_up(batch, 8))
    bp = _round_up(batch, tm)

    inv_tau = 1.0 / tau
    scale = float(inv_tau) ** 0.5   # folded into both operands: logits = cos / tau

    def prep(x):
        # L2-normalize rows in f32, fold sqrt(1/tau), cast back to the input
        # dtype (bf16 inputs keep the MXU in bf16), pad rows, and build the
        # (D, Bp) transpose so the kernel issues plain (TM,D)@(D,Bp) matmuls
        # with a lane-dense Bp axis (no in-kernel transposes).
        xf = x.astype(jnp.float32)
        ss = jnp.sum(xf * xf, axis=1, keepdims=True)
        xn = (xf * (jax.lax.rsqrt(jnp.maximum(ss, 1e-24)) * scale)).astype(x.dtype)
        if bp != batch:
            xn = jnp.pad(xn, ((0, bp - batch), (0, 0)))
        return xn, xn.T

    si, sit = prep(src_zis)
    sj, sjt = prep(src_zjs)
    ti, tit = prep(tar_zis)
    tj, tjt = prep(tar_zjs)

    try:
        cap = pltpu.get_tpu_info().vmem_capacity_bytes
        vmem_limit = min(100 << 20, int(cap * 0.8))
    except Exception:  # non-TPU / older jax fallback
        vmem_limit = 64 << 20

    kernel = functools.partial(_ial_loss_kernel, inv_tau=inv_tau, alpha=ab_weight,
                               zoom=zoom, batch=batch, tile_m=tm)
    lhs_spec = pl.BlockSpec((tm, d), lambda i: (i, 0))
    rhs_spec = pl.BlockSpec((d, bp), lambda i: (0, 0))
    out = pl.pallas_call(
        kernel,
        out_shape=jax.ShapeDtypeStruct((1, 1), jnp.float32),
        grid=(bp // tm,),
        in_specs=[lhs_spec, lhs_spec, lhs_spec, lhs_spec,
                  rhs_spec, rhs_spec, rhs_spec, rhs_spec],
        out_specs=pl.BlockSpec((1, 1), lambda i: (0, 0)),
        scratch_shapes=[
            pltpu.VMEM((1, bp), jnp.float32),   # loss_b: column sum exp(p - c)
            pltpu.VMEM((1, bp), jnp.float32),   # loss_b: column sum exp(q - c)
            pltpu.VMEM((1, bp), jnp.float32),   # loss_b: column sum exp(q - c)*(q - p)
            pltpu.VMEM((1, 1), jnp.float32),    # loss_a running sum
        ],
        compiler_params=pltpu.CompilerParams(
            dimension_semantics=("arbitrary",),
            vmem_limit_bytes=vmem_limit),
    )(si, sj, ti, tj, sjt, sit, tjt, tit)
    return out[0, 0]


def ial_loss_ref(src_emb, tar_emb, train_links, tau=0.05, ab_weight=0.5, zoom=0.1):
    """Plain-JAX mirror of the PyTorch ial_loss forward (defaults)."""
    hp = jax.lax.Precision.HIGHEST
    dn = (((1,), (1,)), ((), ()))

    def normalize(x):
        return x / jnp.maximum(jnp.linalg.norm(x, axis=1, keepdims=True), 1e-12)

    def sim(a, b):  # a @ b.T
        return jax.lax.dot_general(a, b, dn, precision=hp)

    src = normalize(src_emb.astype(jnp.float32))
    tar = normalize(tar_emb.astype(jnp.float32))
    szis, szjs = src[train_links[:, 0]], src[train_links[:, 1]]
    tzis, tzjs = tar[train_links[:, 0]], tar[train_links[:, 1]]
    b = szis.shape[0]
    masks = jnp.eye(b, dtype=jnp.float32) * LARGE_NUM

    p_ab, p_ba = sim(szis, szjs) / tau, sim(szjs, szis) / tau
    q_ab, q_ba = sim(tzis, tzjs) / tau, sim(tzjs, tzis) / tau
    p_aa, p_bb = sim(szis, szis) / tau - masks, sim(szjs, szjs) / tau - masks
    q_aa, q_bb = sim(tzis, tzis) / tau - masks, sim(tzjs, tzjs) / tau - masks

    def kl_mean(p_logits, q_logits):
        logp = jax.nn.log_softmax(p_logits, axis=1)
        logq = jax.nn.log_softmax(q_logits, axis=1)
        q = jnp.exp(logq)
        elt = jnp.where(q > 0, q * (logq - logp), 0.0)  # F.kl_div(reduction='none')
        return elt.mean()

    loss_a = kl_mean(jnp.concatenate([p_ab, p_aa], 1), jnp.concatenate([q_ab, q_aa], 1))
    loss_b = kl_mean(jnp.concatenate([p_ba, p_bb], 1), jnp.concatenate([q_ba, q_bb], 1))
    return zoom * (ab_weight * loss_a + (1.0 - ab_weight) * loss_b)


if __name__ == "__main__":
    key = jax.random.PRNGKey(0)
    k1, k2 = jax.random.split(key)
    num_ent, d, batch = 40, 128, 12   # batch deliberately not a multiple of 8

    src_emb = jax.random.normal(k1, (num_ent, d), dtype=jnp.float32)
    tar_emb = jax.random.normal(k2, (num_ent, d), dtype=jnp.float32)
    left = jnp.arange(batch, dtype=jnp.int32)
    right = jnp.arange(batch, 2 * batch, dtype=jnp.int32)
    train_links = jnp.stack([left, right], axis=1)

    # row_tile=8 -> 2 grid steps: exercises the cross-slab loss_b column
    # accumulation and the row/column padding path (12 -> 16 rows).
    loss = ial_loss_pallas(src_emb, tar_emb, train_links, row_tile=8)
    loss = jax.block_until_ready(loss)

    ref = ial_loss_ref(src_emb, tar_emb, train_links)
    assert jnp.isfinite(loss), loss
    assert jnp.allclose(loss, ref, rtol=2e-3, atol=1e-5), (loss, ref)

    print("KERNEL_OK")
</pallas_src>

<mosaic_0001>
module attributes {stable_mosaic.version = 11 : i64} {
  func.func @_ial_loss_kernel(%arg0: i32, %arg1: memref<8x128xf32, #tpu.memory_space<vmem>>, %arg2: memref<8x128xf32, #tpu.memory_space<vmem>>, %arg3: memref<8x128xf32, #tpu.memory_space<vmem>>, %arg4: memref<8x128xf32, #tpu.memory_space<vmem>>, %arg5: memref<128x16xf32, #tpu.memory_space<vmem>>, %arg6: memref<128x16xf32, #tpu.memory_space<vmem>>, %arg7: memref<128x16xf32, #tpu.memory_space<vmem>>, %arg8: memref<128x16xf32, #tpu.memory_space<vmem>>, %arg9: memref<1x1xf32, #tpu.memory_space<vmem>>, %arg10: memref<1x16xf32, #tpu.memory_space<vmem>>, %arg11: memref<1x16xf32, #tpu.memory_space<vmem>>, %arg12: memref<1x16xf32, #tpu.memory_space<vmem>>, %arg13: memref<1x1xf32, #tpu.memory_space<vmem>>) attributes {dimension_semantics = [#tpu.dimension_semantics<arbitrary>], iteration_bounds = array<i64: 2>, scalar_prefetch = 0 : i64, scratch_operands = 4 : i64, tpu.core_type = #tpu.core_type<tc>, window_params = [{transform_indices = @transform_0, window_bounds = array<i64: 8, 128>}, {transform_indices = @transform_1, window_bounds = array<i64: 8, 128>}, {transform_indices = @transform_2, window_bounds = array<i64: 8, 128>}, {transform_indices = @transform_3, window_bounds = array<i64: 8, 128>}, {pipeline_mode = #tpu.pipeline_mode<synchronous>, transform_indices = @transform_4, window_bounds = array<i64: 128, 16>}, {pipeline_mode = #tpu.pipeline_mode<synchronous>, transform_indices = @transform_5, window_bounds = array<i64: 128, 16>}, {pipeline_mode = #tpu.pipeline_mode<synchronous>, transform_indices = @transform_6, window_bounds = array<i64: 128, 16>}, {pipeline_mode = #tpu.pipeline_mode<synchronous>, transform_indices = @transform_7, window_bounds = array<i64: 128, 16>}, {pipeline_mode = #tpu.pipeline_mode<synchronous>, transform_indices = @transform_8, window_bounds = array<i64: 1, 1>}]} {
    %c0_i32 = arith.constant 0 : i32
    %0 = arith.cmpi eq, %arg0, %c0_i32 : i32
    %1 = arith.extui %0 : i1 to i32
    %c0_i32_0 = arith.constant 0 : i32
    %2 = arith.cmpi ne, %1, %c0_i32_0 : i32
    scf.if %2 {
      %cst_74 = arith.constant 0.000000e+00 : f32
      %131 = vector.broadcast %cst_74 : f32 to vector<1x16xf32>
      %c0_75 = arith.constant 0 : index
      %c0_76 = arith.constant 0 : index
      %132 = vector.load %arg10[%c0_75, %c0_76] : memref<1x16xf32, #tpu.memory_space<vmem>>, vector<1x16xf32>
      tpu.vector_store %arg10[%c0_75, %c0_76], %131 {strides = array<i32>} : memref<1x16xf32, #tpu.memory_space<vmem>>, vector<1x16xf32>,
      %cst_77 = arith.constant 0.000000e+00 : f32
      %133 = vector.broadcast %cst_77 : f32 to vector<1x16xf32>
      %c0_78 = arith.constant 0 : index
      %c0_79 = arith.constant 0 : index
      %134 = vector.load %arg11[%c0_78, %c0_79] : memref<1x16xf32, #tpu.memory_space<vmem>>, vector<1x16xf32>
      tpu.vector_store %arg11[%c0_78, %c0_79], %133 {strides = array<i32>} : memref<1x16xf32, #tpu.memory_space<vmem>>, vector<1x16xf32>,
      %cst_80 = arith.constant 0.000000e+00 : f32
      %135 = vector.broadcast %cst_80 : f32 to vector<1x16xf32>
      %c0_81 = arith.constant 0 : index
      %c0_82 = arith.constant 0 : index
      %136 = vector.load %arg12[%c0_81, %c0_82] : memref<1x16xf32, #tpu.memory_space<vmem>>, vector<1x16xf32>
      tpu.vector_store %arg12[%c0_81, %c0_82], %135 {strides = array<i32>} : memref<1x16xf32, #tpu.memory_space<vmem>>, vector<1x16xf32>,
      %cst_83 = arith.constant 0.000000e+00 : f32
      %137 = vector.broadcast %cst_83 : f32 to vector<1x1xf32>
      %c0_84 = arith.constant 0 : index
      %c0_85 = arith.constant 0 : index
      %138 = vector.load %arg13[%c0_84, %c0_85] : memref<1x1xf32, #tpu.memory_space<vmem>>, vector<1x1xf32>
      tpu.vector_store %arg13[%c0_84, %c0_85], %137 {strides = array<i32>} : memref<1x1xf32, #tpu.memory_space<vmem>>, vector<1x1xf32>,
    } else {
    }
    %c8_i32 = arith.constant 8 : i32
    %3 = arith.muli %arg0, %c8_i32 : i32
    %4 = tpu.iota {dimensions = array<i32: 0>} : vector<8x16xi32>
    %5 = vector.broadcast %3 : i32 to vector<8x16xi32>
    %6 = arith.addi %5, %4 : vector<8x16xi32>
    %7 = tpu.iota {dimensions = array<i32: 1>} : vector<8x16xi32>
    %8 = arith.cmpi eq, %6, %7 : vector<8x16xi32>
    %c12_i32 = arith.constant 12 : i32
    %9 = vector.broadcast %c12_i32 : i32 to vector<8x16xi32>
    %10 = arith.cmpi sge, %6, %9 : vector<8x16xi32>
    %c12_i32_1 = arith.constant 12 : i32
    %11 = vector.broadcast %c12_i32_1 : i32 to vector<8x16xi32>
    %12 = arith.cmpi sge, %7, %11 : vector<8x16xi32>
    %13 = arith.ori %10, %12 : vector<8x16xi1>
    %14 = arith.ori %13, %8 : vector<8x16xi1>
    %c0 = arith.constant 0 : index
    %c0_2 = arith.constant 0 : index
    %15 = vector.load %arg1[%c0, %c0_2] : memref<8x128xf32, #tpu.memory_space<vmem>>, vector<8x128xf32>
    %c0_3 = arith.constant 0 : index
    %c0_4 = arith.constant 0 : index
    %16 = vector.load %arg5[%c0_3, %c0_4] : memref<128x16xf32, #tpu.memory_space<vmem>>, vector<128x16xf32>
    %cst = arith.constant dense<0.000000e+00> : vector<8x16xf32>
    %17 = tpu.matmul %15, %16, %cst {dimension_numbers = #tpu.dot_dimension_numbers<[1], [0], [0], [1], [0, 0, 1, 1], [], []>} : vector<8x128xf32>, vector<128x16xf32>, vector<8x16xf32> -> vector<8x16xf32>
    %c0_5 = arith.constant 0 : index
    %c0_6 = arith.constant 0 : index
    %18 = vector.load %arg3[%c0_5, %c0_6] : memref<8x128xf32, #tpu.memory_space<vmem>>, vector<8x128xf32>
    %c0_7 = arith.constant 0 : index
    %c0_8 = arith.constant 0 : index
    %19 = vector.load %arg7[%c0_7, %c0_8] : memref<128x16xf32, #tpu.memory_space<vmem>>, vector<128x16xf32>
    %cst_9 = arith.constant dense<0.000000e+00> : vector<8x16xf32>
    %20 = tpu.matmul %18, %19, %cst_9 {dimension_numbers = #tpu.dot_dimension_numbers<[1], [0], [0], [1], [0, 0, 1, 1], [], []>} : vector<8x128xf32>, vector<128x16xf32>, vector<8x16xf32> -> vector<8x16xf32>
    %21 = arith.subf %20, %17 : vector<8x16xf32>
    %cst_10 = arith.constant 2.000000e+01 : f32
    %22 = vector.broadcast %cst_10 : f32 to vector<8x16xf32>
    %23 = arith.subf %17, %22 : vector<8x16xf32>
    %24 = math.exp %23 : vector<8x16xf32>
    %cst_11 = arith.constant 0.000000e+00 : f32
    %25 = vector.broadcast %cst_11 : f32 to vector<8x16xf32>
    %26 = arith.select %13, %25, %24 : vector<8x16xi1>, vector<8x16xf32>
    %cst_12 = arith.constant 2.000000e+01 : f32
    %27 = vector.broadcast %cst_12 : f32 to vector<8x16xf32>
    %28 = arith.subf %20, %27 : vector<8x16xf32>
    %29 = math.exp %28 : vector<8x16xf32>
    %cst_13 = arith.constant 0.000000e+00 : f32
    %30 = vector.broadcast %cst_13 : f32 to vector<8x16xf32>
    %31 = arith.select %13, %30, %29 : vector<8x16xi1>, vector<8x16xf32>
    %32 = arith.mulf %31, %21 : vector<8x16xf32>
    %cst_14 = arith.constant dense<0.000000e+00> : vector<8xf32>
    %33 = vector.multi_reduction <add>, %26, %cst_14 [1] : vector<8x16xf32> to vector<8xf32>
    %34 = vector.shape_cast %33 : vector<8xf32> to vector<8x1xf32>
    %cst_15 = arith.constant dense<0.000000e+00> : vector<8xf32>
    %35 = vector.multi_reduction <add>, %31, %cst_15 [1] : vector<8x16xf32> to vector<8xf32>
    %36 = vector.shape_cast %35 : vector<8xf32> to vector<8x1xf32>
    %cst_16 = arith.constant dense<0.000000e+00> : vector<8xf32>
    %37 = vector.multi_reduction <add>, %32, %cst_16 [1] : vector<8x16xf32> to vector<8xf32>
    %38 = vector.shape_cast %37 : vector<8xf32> to vector<8x1xf32>
    %cst_17 = arith.constant dense<0.000000e+00> : vector<16xf32>
    %39 = vector.multi_reduction <add>, %26, %cst_17 [0] : vector<8x16xf32> to vector<16xf32>
    %40 = vector.shape_cast %39 : vector<16xf32> to vector<1x16xf32>
    %cst_18 = arith.constant dense<0.000000e+00> : vector<16xf32>
    %41 = vector.multi_reduction <add>, %31, %cst_18 [0] : vector<8x16xf32> to vector<16xf32>
    %42 = vector.shape_cast %41 : vector<16xf32> to vector<1x16xf32>
    %cst_19 = arith.constant dense<0.000000e+00> : vector<16xf32>
    %43 = vector.multi_reduction <add>, %32, %cst_19 [0] : vector<8x16xf32> to vector<16xf32>
    %44 = vector.shape_cast %43 : vector<16xf32> to vector<1x16xf32>
    %c0_20 = arith.constant 0 : index
    %c0_21 = arith.constant 0 : index
    %45 = vector.load %arg1[%c0_20, %c0_21] : memref<8x128xf32, #tpu.memory_space<vmem>>, vector<8x128xf32>
    %c0_22 = arith.constant 0 : index
    %c0_23 = arith.constant 0 : index
    %46 = vector.load %arg6[%c0_22, %c0_23] : memref<128x16xf32, #tpu.memory_space<vmem>>, vector<128x16xf32>
    %cst_24 = arith.constant dense<0.000000e+00> : vector<8x16xf32>
    %47 = tpu.matmul %45, %46, %cst_24 {dimension_numbers = #tpu.dot_dimension_numbers<[1], [0], [0], [1], [0, 0, 1, 1], [], []>} : vector<8x128xf32>, vector<128x16xf32>, vector<8x16xf32> -> vector<8x16xf32>
    %c0_25 = arith.constant 0 : index
    %c0_26 = arith.constant 0 : index
    %48 = vector.load %arg3[%c0_25, %c0_26] : memref<8x128xf32, #tpu.memory_space<vmem>>, vector<8x128xf32>
    %c0_27 = arith.constant 0 : index
    %c0_28 = arith.constant 0 : index
    %49 = vector.load %arg8[%c0_27, %c0_28] : memref<128x16xf32, #tpu.memory_space<vmem>>, vector<128x16xf32>
    %cst_29 = arith.constant dense<0.000000e+00> : vector<8x16xf32>
    %50 = tpu.matmul %48, %49, %cst_29 {dimension_numbers = #tpu.dot_dimension_numbers<[1], [0], [0], [1], [0, 0, 1, 1], [], []>} : vector<8x128xf32>, vector<128x16xf32>, vector<8x16xf32> -> vector<8x16xf32>
    %51 = arith.subf %50, %47 : vector<8x16xf32>
    %cst_30 = arith.constant 2.000000e+01 : f32
    %52 = vector.broadcast %cst_30 : f32 to vector<8x16xf32>
    %53 = arith.subf %47, %52 : vector<8x16xf32>
    %54 = math.exp %53 : vector<8x16xf32>
    %cst_31 = arith.constant 0.000000e+00 : f32
    %55 = vector.broadcast %cst_31 : f32 to vector<8x16xf32>
    %56 = arith.select %14, %55, %54 : vector<8x16xi1>, vector<8x16xf32>
    %cst_32 = arith.constant 2.000000e+01 : f32
    %57 = vector.broadcast %cst_32 : f32 to vector<8x16xf32>
    %58 = arith.subf %50, %57 : vector<8x16xf32>
    %59 = math.exp %58 : vector<8x16xf32>
    %cst_33 = arith.constant 0.000000e+00 : f32
    %60 = vector.broadcast %cst_33 : f32 to vector<8x16xf32>
    %61 = arith.select %14, %60, %59 : vector<8x16xi1>, vector<8x16xf32>
    %cst_34 = arith.constant dense<0.000000e+00> : vector<8xf32>
    %62 = vector.multi_reduction <add>, %56, %cst_34 [1] : vector<8x16xf32> to vector<8xf32>
    %63 = vector.shape_cast %62 : vector<8xf32> to vector<8x1xf32>
    %64 = arith.addf %34, %63 : vector<8x1xf32>
    %cst_35 = arith.constant dense<0.000000e+00> : vector<8xf32>
    %65 = vector.multi_reduction <add>, %61, %cst_35 [1] : vector<8x16xf32> to vector<8xf32>
    %66 = vector.shape_cast %65 : vector<8xf32> to vector<8x1xf32>
    %67 = arith.addf %36, %66 : vector<8x1xf32>
    %68 = arith.mulf %61, %51 : vector<8x16xf32>
    %cst_36 = arith.constant dense<0.000000e+00> : vector<8xf32>
    %69 = vector.multi_reduction <add>, %68, %cst_36 [1] : vector<8x16xf32> to vector<8xf32>
    %70 = vector.shape_cast %69 : vector<8xf32> to vector<8x1xf32>
    %71 = arith.addf %38, %70 : vector<8x1xf32>
    %c0_37 = arith.constant 0 : index
    %c0_38 = arith.constant 0 : index
    %72 = vector.load %arg2[%c0_37, %c0_38] : memref<8x128xf32, #tpu.memory_space<vmem>>, vector<8x128xf32>
    %c0_39 = arith.constant 0 : index
    %c0_40 = arith.constant 0 : index
    %73 = vector.load %arg5[%c0_39, %c0_40] : memref<128x16xf32, #tpu.memory_space<vmem>>, vector<128x16xf32>
    %cst_41 = arith.constant dense<0.000000e+00> : vector<8x16xf32>
    %74 = tpu.matmul %72, %73, %cst_41 {dimension_numbers = #tpu.dot_dimension_numbers<[1], [0], [0], [1], [0, 0, 1, 1], [], []>} : vector<8x128xf32>, vector<128x16xf32>, vector<8x16xf32> -> vector<8x16xf32>
    %c0_42 = arith.constant 0 : index
    %c0_43 = arith.constant 0 : index
    %75 = vector.load %arg4[%c0_42, %c0_43] : memref<8x128xf32, #tpu.memory_space<vmem>>, vector<8x128xf32>
    %c0_44 = arith.constant 0 : index
    %c0_45 = arith.constant 0 : index
    %76 = vector.load %arg7[%c0_44, %c0_45] : memref<128x16xf32, #tpu.memory_space<vmem>>, vector<128x16xf32>
    %cst_46 = arith.constant dense<0.000000e+00> : vector<8x16xf32>
    %77 = tpu.matmul %75, %76, %cst_46 {dimension_numbers = #tpu.dot_dimension_numbers<[1], [0], [0], [1], [0, 0, 1, 1], [], []>} : vector<8x128xf32>, vector<128x16xf32>, vector<8x16xf32> -> vector<8x16xf32>
    %78 = arith.subf %77, %74 : vector<8x16xf32>
    %cst_47 = arith.constant 2.000000e+01 : f32
    %79 = vector.broadcast %cst_47 : f32 to vector<8x16xf32>
    %80 = arith.subf %74, %79 : vector<8x16xf32>
    %81 = math.exp %80 : vector<8x16xf32>
    %cst_48 = arith.constant 0.000000e+00 : f32
    %82 = vector.broadcast %cst_48 : f32 to vector<8x16xf32>
    %83 = arith.select %14, %82, %81 : vector<8x16xi1>, vector<8x16xf32>
    %cst_49 = arith.constant 2.000000e+01 : f32
    %84 = vector.broadcast %cst_49 : f32 to vector<8x16xf32>
    %85 = arith.subf %77, %84 : vector<8x16xf32>
    %86 = math.exp %85 : vector<8x16xf32>
    %cst_50 = arith.constant 0.000000e+00 : f32
    %87 = vector.broadcast %cst_50 : f32 to vector<8x16xf32>
    %88 = arith.select %14, %87, %86 : vector<8x16xi1>, vector<8x16xf32>
    %89 = arith.mulf %88, %78 : vector<8x16xf32>
    %cst_51 = arith.constant dense<0.000000e+00> : vector<16xf32>
    %90 = vector.multi_reduction <add>, %83, %cst_51 [0] : vector<8x16xf32> to vector<16xf32>
    %91 = vector.shape_cast %90 : vector<16xf32> to vector<1x16xf32>
    %92 = arith.addf %40, %91 : vector<1x16xf32>
    %cst_52 = arith.constant dense<0.000000e+00> : vector<16xf32>
    %93 = vector.multi_reduction <add>, %88, %cst_52 [0] : vector<8x16xf32> to vector<16xf32>
    %94 = vector.shape_cast %93 : vector<16xf32> to vector<1x16xf32>
    %95 = arith.addf %42, %94 : vector<1x16xf32>
    %cst_53 = arith.constant dense<0.000000e+00> : vector<16xf32>
    %96 = vector.multi_reduction <add>, %89, %cst_53 [0] : vector<8x16xf32> to vector<16xf32>
    %97 = vector.shape_cast %96 : vector<16xf32> to vector<1x16xf32>
    %98 = arith.addf %44, %97 : vector<1x16xf32>
    %99 = arith.divf %71, %67 : vector<8x1xf32>
    %100 = math.log %64 : vector<8x1xf32>
    %101 = math.log %67 : vector<8x1xf32>
    %102 = arith.subf %100, %101 : vector<8x1xf32>
    %103 = arith.addf %99, %102 : vector<8x1xf32>
    %104 = tpu.iota {dimensions = array<i32: 0>} : vector<8x1xi32>
    %105 = vector.broadcast %3 : i32 to vector<8x1xi32>
    %106 = arith.addi %105, %104 : vector<8x1xi32>
    %c12_i32_54 = arith.constant 12 : i32
    %107 = vector.broadcast %c12_i32_54 : i32 to vector<8x1xi32>
    %108 = arith.cmpi sge, %106, %107 : vector<8x1xi32>
    %cst_55 = arith.constant 0.000000e+00 : f32
    %109 = vector.broadcast %cst_55 : f32 to vector<8x1xf32>
    %110 = arith.select %108, %109, %103 : vector<8x1xi1>, vector<8x1xf32>
    %c0_56 = arith.constant 0 : index
    %c0_57 = arith.constant 0 : index
    %111 = vector.load %arg13[%c0_56, %c0_57] : memref<1x1xf32, #tpu.memory_space<vmem>>, vector<1x1xf32>
    %112 = vector.shape_cast %110 : vector<8x1xf32> to vector<1x8x1xf32>
    %cst_58 = arith.constant dense<0.000000e+00> : vector<1xf32>
    %113 = vector.multi_reduction <add>, %112, %cst_58 [1, 2] : vector<1x8x1xf32> to vector<1xf32>
    %114 = vector.shape_cast %113 : vector<1xf32> to vector<1x1x1xf32>
    %115 = vector.extract %114[0, 0, 0] : f32 from vector<1x1x1xf32>
    %116 = vector.broadcast %115 : f32 to vector<1x1xf32>
    %117 = arith.addf %111, %116 : vector<1x1xf32>
    %c0_59 = arith.constant 0 : index
    %c0_60 = arith.constant 0 : index
    %118 = vector.load %arg13[%c0_59, %c0_60] : memref<1x1xf32, #tpu.memory_space<vmem>>, vector<1x1xf32>
    tpu.vector_store %arg13[%c0_59, %c0_60], %117 {strides = array<i32>} : memref<1x1xf32, #tpu.memory_space<vmem>>, vector<1x1xf32>,
    %c0_61 = arith.constant 0 : index
    %c0_62 = arith.constant 0 : index
    %119 = vector.load %arg10[%c0_61, %c0_62] : memref<1x16xf32, #tpu.memory_space<vmem>>, vector<1x16xf32>
    %120 = arith.addf %119, %92 : vector<1x16xf32>
    %c0_63 = arith.constant 0 : index
    %c0_64 = arith.constant 0 : index
    %121 = vector.load %arg10[%c0_63, %c0_64] : memref<1x16xf32, #tpu.memory_space<vmem>>, vector<1x16xf32>
    tpu.vector_store %arg10[%c0_63, %c0_64], %120 {strides = array<i32>} : memref<1x16xf32, #tpu.memory_space<vmem>>, vector<1x16xf32>,
    %c0_65 = arith.constant 0 : index
    %c0_66 = arith.constant 0 : index
    %122 = vector.load %arg11[%c0_65, %c0_66] : memref<1x16xf32, #tpu.memory_space<vmem>>, vector<1x16xf32>
    %123 = arith.addf %122, %95 : vector<1x16xf32>
    %c0_67 = arith.constant 0 : index
    %c0_68 = arith.constant 0 : index
    %124 = vector.load %arg11[%c0_67, %c0_68] : memref<1x16xf32, #tpu.memory_space<vmem>>, vector<1x16xf32>
    tpu.vector_store %arg11[%c0_67, %c0_68], %123 {strides = array<i32>} : memref<1x16xf32, #tpu.memory_space<vmem>>, vector<1x16xf32>,
    %c0_69 = arith.constant 0 : index
    %c0_70 = arith.constant 0 : index
    %125 = vector.load %arg12[%c0_69, %c0_70] : memref<1x16xf32, #tpu.memory_space<vmem>>, vector<1x16xf32>
    %126 = arith.addf %125, %98 : vector<1x16xf32>
    %c0_71 = arith.constant 0 : index
    %c0_72 = arith.constant 0 : index
    %127 = vector.load %arg12[%c0_71, %c0_72] : memref<1x16xf32, #tpu.memory_space<vmem>>, vector<1x16xf32>
    tpu.vector_store %arg12[%c0_71, %c0_72], %126 {strides = array<i32>} : memref<1x16xf32, #tpu.memory_space<vmem>>, vector<1x16xf32>,
    %c1_i32 = arith.constant 1 : i32
    %128 = arith.cmpi eq, %arg0, %c1_i32 : i32
    %129 = arith.extui %128 : i1 to i32
    %c0_i32_73 = arith.constant 0 : i32
    %130 = arith.cmpi ne, %129, %c0_i32_73 : i32
    scf.if %130 {
      %c0_74 = arith.constant 0 : index
      %c0_75 = arith.constant 0 : index
      %131 = vector.load %arg11[%c0_74, %c0_75] : memref<1x16xf32, #tpu.memory_space<vmem>>, vector<1x16xf32>
      %c0_76 = arith.constant 0 : index
      %c0_77 = arith.constant 0 : index
      %132 = vector.load %arg12[%c0_76, %c0_77] : memref<1x16xf32, #tpu.memory_space<vmem>>, vector<1x16xf32>
      %133 = arith.divf %132, %131 : vector<1x16xf32>
      %c0_78 = arith.constant 0 : index
      %c0_79 = arith.constant 0 : index
      %134 = vector.load %arg10[%c0_78, %c0_79] : memref<1x16xf32, #tpu.memory_space<vmem>>, vector<1x16xf32>
      %135 = math.log %134 : vector<1x16xf32>
      %136 = math.log %131 : vector<1x16xf32>
      %137 = arith.subf %135, %136 : vector<1x16xf32>
      %138 = arith.addf %133, %137 : vector<1x16xf32>
      %139 = tpu.iota {dimensions = array<i32: 1>} : vector<1x16xi32>
      %c12_i32_80 = arith.constant 12 : i32
      %140 = vector.broadcast %c12_i32_80 : i32 to vector<1x16xi32>
      %141 = arith.cmpi sge, %139, %140 : vector<1x16xi32>
      %cst_81 = arith.constant 0.000000e+00 : f32
      %142 = vector.broadcast %cst_81 : f32 to vector<1x16xf32>
      %143 = arith.select %141, %142, %138 : vector<1x16xi1>, vector<1x16xf32>
      %144 = vector.shape_cast %143 : vector<1x16xf32> to vector<1x1x16xf32>
      %cst_82 = arith.constant dense<0.000000e+00> : vector<1xf32>
      %145 = vector.multi_reduction <add>, %144, %cst_82 [1, 2] : vector<1x1x16xf32> to vector<1xf32>
      %146 = vector.shape_cast %145 : vector<1xf32> to vector<1x1x1xf32>
      %147 = vector.extract %146[0, 0, 0] : f32 from vector<1x1x1xf32>
      %148 = vector.broadcast %147 : f32 to vector<1x1xf32>
      %c0_83 = arith.constant 0 : index
      %c0_84 = arith.constant 0 : index
      %149 = vector.load %arg13[%c0_83, %c0_84] : memref<1x1xf32, #tpu.memory_space<vmem>>, vector<1x1xf32>
      %cst_85 = arith.constant 5.000000e-01 : f32
      %150 = vector.broadcast %cst_85 : f32 to vector<1x1xf32>
      %151 = arith.mulf %150, %149 : vector<1x1xf32>
      %cst_86 = arith.constant 5.000000e-01 : f32
      %152 = vector.broadcast %cst_86 : f32 to vector<1x1xf32>
      %153 = arith.mulf %152, %148 : vector<1x1xf32>
      %154 = arith.addf %151, %153 : vector<1x1xf32>
      %cst_87 = arith.constant 1.000000e-01 : f32
      %155 = vector.broadcast %cst_87 : f32 to vector<1x1xf32>
      %156 = arith.mulf %155, %154 : vector<1x1xf32>
      %cst_88 = arith.constant 0.00347222225 : f32
      %157 = vector.broadcast %cst_88 : f32 to vector<1x1xf32>
      %158 = arith.mulf %156, %157 : vector<1x1xf32>
      %c0_89 = arith.constant 0 : index
      %c0_90 = arith.constant 0 : index
      %159 = vector.load %arg9[%c0_89, %c0_90] : memref<1x1xf32, #tpu.memory_space<vmem>>, vector<1x1xf32>
      tpu.vector_store %arg9[%c0_89, %c0_90], %158 {strides = array<i32>} : memref<1x1xf32, #tpu.memory_space<vmem>>, vector<1x1xf32>,
    } else {
    }
    return
  }
  func.func @transform_0(%arg0: i32) -> (i32, i32) {
    %c0_i32 = arith.constant 0 : i32
    %c0_i32_0 = arith.constant 0 : i32
    return %arg0, %c0_i32 : i32, i32
  }
  func.func @transform_1(%arg0: i32) -> (i32, i32) {
    %c0_i32 = arith.constant 0 : i32
    %c0_i32_0 = arith.constant 0 : i32
    return %arg0, %c0_i32 : i32, i32
  }
  func.func @transform_2(%arg0: i32) -> (i32, i32) {
    %c0_i32 = arith.constant 0 : i32
    %c0_i32_0 = arith.constant 0 : i32
    return %arg0, %c0_i32 : i32, i32
  }
  func.func @transform_3(%arg0: i32) -> (i32, i32) {
    %c0_i32 = arith.constant 0 : i32
    %c0_i32_0 = arith.constant 0 : i32
    return %arg0, %c0_i32 : i32, i32
  }
  func.func @transform_4(%arg0: i32) -> (i32, i32) {
    %c0_i32 = arith.constant 0 : i32
    %c0_i32_0 = arith.constant 0 : i32
    %c0_i32_1 = arith.constant 0 : i32
    return %c0_i32, %c0_i32_0 : i32, i32
  }
  func.func @transform_5(%arg0: i32) -> (i32, i32) {
    %c0_i32 = arith.constant 0 : i32
    %c0_i32_0 = arith.constant 0 : i32
    %c0_i32_1 = arith.constant 0 : i32
    return %c0_i32, %c0_i32_0 : i32, i32
  }
  func.func @transform_6(%arg0: i32) -> (i32, i32) {
    %c0_i32 = arith.constant 0 : i32
    %c0_i32_0 = arith.constant 0 : i32
    %c0_i32_1 = arith.constant 0 : i32
    return %c0_i32, %c0_i32_0 : i32, i32
  }
  func.func @transform_7(%arg0: i32) -> (i32, i32) {
    %c0_i32 = arith.constant 0 : i32
    %c0_i32_0 = arith.constant 0 : i32
    %c0_i32_1 = arith.constant 0 : i32
    return %c0_i32, %c0_i32_0 : i32, i32
  }
  func.func @transform_8(%arg0: i32) -> (i32, i32) {
    %c0_i32 = arith.constant 0 : i32
    %c0_i32_0 = arith.constant 0 : i32
    %c0_i32_1 = arith.constant 0 : i32
    return %c0_i32, %c0_i32_0 : i32, i32
  }
}

</mosaic_0001>

<bundles_post_ra>
// kernel: tpu_custom_call.1
= control target key start
LH: loop header
LB: loop body
LE: loop exit
PB: predicated region body
PF: predicated region fallthrough
CT: control target
= control target key end

     0   :  { %13 = vsyncpa [#allocation7], 0  ;;  %s975_s27 = smov 0   ;;  %s1384_s0 = inlined_call_operand.vmem [shape: f32[16,128], index: 0, kind: input, shape index: {}]   ;;  %s1385_s1 = inlined_call_operand.vmem [shape: f32[16,128], index: 1, kind: input, shape index: {}]   ;;  %s1386_s2 = inlined_call_operand.vmem [shape: f32[16,128], index: 2, kind: input, shape index: {}]   ;;  %s1387_s3 = inlined_call_operand.vmem [shape: f32[16,128], index: 3, kind: input, shape index: {}]   ;;  %s1388_s4 = inlined_call_operand.vmem [shape: f32[128,16], index: 4, kind: input, shape index: {}]   ;;  %s1389_s5 = inlined_call_operand.vmem [shape: f32[128,16], index: 5, kind: input, shape index: {}]   ;;  %s1390_s6 = inlined_call_operand.vmem [shape: f32[128,16], index: 6, kind: input, shape index: {}]   ;;  %s1391_s7 = inlined_call_operand.vmem [shape: f32[128,16], index: 7, kind: input, shape index: {}]   ;;  %s1392_s8 = inlined_call_operand.hbm [shape: f32[1,1], index: 8, kind: output, shape index: {}]  }
   0x1 LB: > { %s981_s28 = sadd.s32 4294967295, %s926_s27   ;;  %p826_p0 = scmp.ge.s32.totalorder %s926_s27, 1  ;;  %s926_s27 = sphi %s975_s27, %s19_s27  }
   0x2   : > { %p284_p1 = scmp.lt.s32.totalorder %s926_s27, 3 }
   0x4   : > { %p285_p2 = pnand %p826_p0, %p284_p1 }
   0x5   : > { %p324_p3 = scmp.lt.s32.totalorder (!%p285_p2), %s981_s28, 1  ;;  %p831_p4 = scmp.ne.s32.totalorder (!%p285_p2), %s981_s28, 0 }
   0x6   : > { %288 = sbr.rel (%p285_p2) target bundleno = 743 (0x2e7), region = 52 }
   0xb   : > { %s325_s29 = scalar_select %p324_p3, %s981_s28, 1 }
   0xc   : > { %343 = sbr.rel (%p831_p4) target bundleno = 22 (0x16), region = 56 }
   0xd   : > { %s987_s30 = sshll.u32 %s325_s29, 3 }
   0xe   : > { %s327_s11 = scalar_lea.vmem %s1384_s0, %s987_s30  ;;  %s331_s14 = scalar_lea.vmem %s1385_s1, %s987_s30 }
   0xf   : > { %s335_s17 = scalar_lea.vmem %s1386_s2, %s987_s30  ;;  %s339_s20 = scalar_lea.vmem %s1387_s3, %s987_s30 }
  0x11   : > { %vm344_vm0 = vcmask 122880   ;;  %v928_v0 = vmov 0.0   ;;  %vm348_vm1 = vcmask 0  }
  0x12   : > { %345 = vst.msk [vmem:[#allocation2] sm:$0x1] %vm344_vm0, %v928_v0 }
  0x13   : > { %346 = vst.msk [vmem:[#allocation3] sm:$0x1] %vm344_vm0, %v928_v0 }
  0x14   : > { %347 = vst.msk [vmem:[#allocation4] sm:$0x1] %vm344_vm0, %v928_v0 }
  0x15   : > { %349 = vst.msk [vmem:[#allocation5] sm:$0x1] %vm348_vm1, %v928_v0 }
  0x16 PF: > { %v1009_v1 = vld [vmem:[%s1388_s4 + $0x78] sm:$0xff]  ;;  %v1024_v4 = vld [vmem:[%s1388_s4 + $0x70] sm:$0xff]  ;;  %v1040_v8 = vld [vmem:[%s1388_s4 + $0x68] sm:$0xff]  ;;  %s832_s19 = sshll.u32 %s981_s28, 3  ;;  %vm446_vm5 = vcmask 130048   ;;  %vm684_vm8 = vcmask 122880  }
  0x17   : > { %v1014_v2 = vld [vmem:[%s1390_s6 + $0x78] sm:$0xff]  ;;  %379 = vmatpush.msra.mxu0 %v1009_v1  ;;  %v1029_v5 = vld [vmem:[%s1390_s6 + $0x70] sm:$0xff]  ;;  %v1045_v9 = vld [vmem:[%s1390_s6 + $0x68] sm:$0xff]  ;;  %vm667_vm13 = vcmask 7168   ;;  %vm680_vm14 = vcmask 0   ;;  %p839_p5 = scmp.ne.s32.totalorder %s981_s28, 1 }
  0x18   : > { %v525_v3 = vld [vmem:[%s1391_s7 + $0x78] sm:$0xff]  ;;  %416 = vmatpush.msra.mxu1 %v1014_v2  ;;  %v524_v7 = vld [vmem:[%s1391_s7 + $0x70] sm:$0xff]  ;;  %v523_v11 = vld [vmem:[%s1391_s7 + $0x68] sm:$0xff] }
  0x19   : > { %v489_v6 = vld [vmem:[%s1389_s5 + $0x78] sm:$0xff]  ;;  %526 = vmatpush.msra.mxu3 %v525_v3  ;;  %380 = vmatpush.msra.mxu0 %v1024_v4  ;;  %v488_v10 = vld [vmem:[%s1389_s5 + $0x70] sm:$0xff]  ;;  %v1058_v12 = vld [vmem:[%s1388_s4 + $0x60] sm:$0xff] }
  0x1a   : > { %490 = vmatpush.msra.mxu2 %v489_v6  ;;  %417 = vmatpush.msra.mxu1 %v1029_v5  ;;  %v1063_v13 = vld [vmem:[%s1390_s6 + $0x60] sm:$0xff]  ;;  %v487_v14 = vld [vmem:[%s1389_s5 + $0x68] sm:$0xff]  ;;  %v1079_v17 = vld [vmem:[%s1388_s4 + $0x58] sm:$0xff] }
  0x1b   : > { %527 = vmatpush.msra.mxu3 %v524_v7  ;;  %381 = vmatpush.msra.mxu0 %v1040_v8  ;;  %v522_v15 = vld [vmem:[%s1391_s7 + $0x60] sm:$0xff]  ;;  %v1084_v18 = vld [vmem:[%s1390_s6 + $0x58] sm:$0xff]  ;;  %v1097_v21 = vld [vmem:[%s1388_s4 + $0x50] sm:$0xff]  ;;  %v353_v7 = vstv %s832_s19 }
  0x1c   : > { %491 = vmatpush.msra.mxu2 %v488_v10  ;;  %418 = vmatpush.msra.mxu1 %v1045_v9  ;;  %v486_v16 = vld [vmem:[%s1389_s5 + $0x60] sm:$0xff]  ;;  %v521_v19 = vld [vmem:[%s1391_s7 + $0x58] sm:$0xff]  ;;  %v1102_v22 = vld [vmem:[%s1390_s6 + $0x50] sm:$0xff] }
  0x1d   : > { %528 = vmatpush.msra.mxu3 %v523_v11  ;;  %382 = vmatpush.msra.mxu0 %v1058_v12  ;;  %v485_v20 = vld [vmem:[%s1389_s5 + $0x58] sm:$0xff]  ;;  %v520_v23 = vld [vmem:[%s1391_s7 + $0x50] sm:$0xff]  ;;  %v1115_v25 = vld [vmem:[%s1388_s4 + $0x48] sm:$0xff] }
  0x1e   : > { %492 = vmatpush.msra.mxu2 %v487_v14  ;;  %419 = vmatpush.msra.mxu1 %v1063_v13  ;;  %v484_v24 = vld [vmem:[%s1389_s5 + $0x50] sm:$0xff]  ;;  %v1120_v26 = vld [vmem:[%s1390_s6 + $0x48] sm:$0xff]  ;;  %v1133_v29 = vld [vmem:[%s1388_s4 + $0x40] sm:$0xff] }
  0x1f   : > { %529 = vmatpush.msra.mxu3 %v522_v15  ;;  %383 = vmatpush.msra.mxu0 %v1079_v17  ;;  %v519_v27 = vld [vmem:[%s1391_s7 + $0x48] sm:$0xff]  ;;  %v1138_v30 = vld [vmem:[%s1390_s6 + $0x40] sm:$0xff]  ;;  %v1151_v33 = vld [vmem:[%s1388_s4 + $0x38] sm:$0xff] }
  0x20   : > { %493 = vmatpush.msra.mxu2 %v486_v16  ;;  %420 = vmatpush.msra.mxu1 %v1084_v18  ;;  %v483_v28 = vld [vmem:[%s1389_s5 + $0x48] sm:$0xff]  ;;  %v518_v31 = vld [vmem:[%s1391_s7 + $0x40] sm:$0xff]  ;;  %v1156_v34 = vld [vmem:[%s1390_s6 + $0x38] sm:$0xff] }
  0x21   : > { %530 = vmatpush.msra.mxu3 %v521_v19  ;;  %384 = vmatpush.msra.mxu0 %v1097_v21  ;;  %v482_v32 = vld [vmem:[%s1389_s5 + $0x40] sm:$0xff]  ;;  %v517_v35 = vld [vmem:[%s1391_s7 + $0x38] sm:$0xff]  ;;  %v1169_v37 = vld [vmem:[%s1388_s4 + $0x30] sm:$0xff] }
  0x22   : > { %494 = vmatpush.msra.mxu2 %v485_v20  ;;  %421 = vmatpush.msra.mxu1 %v1102_v22  ;;  %v481_v36 = vld [vmem:[%s1389_s5 + $0x38] sm:$0xff]  ;;  %v1174_v38 = vld [vmem:[%s1390_s6 + $0x30] sm:$0xff]  ;;  %v1187_v41 = vld [vmem:[%s1388_s4 + $0x28] sm:$0xff] }
  0x23   : > { %531 = vmatpush.msra.mxu3 %v520_v23  ;;  %385 = vmatpush.msra.mxu0 %v1115_v25  ;;  %v516_v39 = vld [vmem:[%s1391_s7 + $0x30] sm:$0xff]  ;;  %v1192_v42 = vld [vmem:[%s1390_s6 + $0x28] sm:$0xff]  ;;  %v1205_v45 = vld [vmem:[%s1388_s4 + $0x20] sm:$0xff] }
  0x24   : > { %495 = vmatpush.msra.mxu2 %v484_v24  ;;  %422 = vmatpush.msra.mxu1 %v1120_v26  ;;  %v480_v40 = vld [vmem:[%s1389_s5 + $0x30] sm:$0xff]  ;;  %v515_v43 = vld [vmem:[%s1391_s7 + $0x28] sm:$0xff]  ;;  %v1210_v46 = vld [vmem:[%s1390_s6 + $0x20] sm:$0xff] }
  0x25   : > { %532 = vmatpush.msra.mxu3 %v519_v27  ;;  %386 = vmatpush.msra.mxu0 %v1133_v29  ;;  %v479_v44 = vld [vmem:[%s1389_s5 + $0x28] sm:$0xff]  ;;  %v514_v47 = vld [vmem:[%s1391_s7 + $0x20] sm:$0xff]  ;;  %v1223_v49 = vld [vmem:[%s1388_s4 + $0x18] sm:$0xff] }
  0x26   : > { %496 = vmatpush.msra.mxu2 %v483_v28  ;;  %423 = vmatpush.msra.mxu1 %v1138_v30  ;;  %v478_v48 = vld [vmem:[%s1389_s5 + $0x20] sm:$0xff]  ;;  %v1228_v50 = vld [vmem:[%s1390_s6 + $0x18] sm:$0xff]  ;;  %v365_v53 = vld [vmem:[%s1388_s4 + $0x10] sm:$0xff] }
  0x27   : > { %533 = vmatpush.msra.mxu3 %v518_v31  ;;  %387 = vmatpush.msra.mxu0 %v1151_v33  ;;  %v513_v51 = vld [vmem:[%s1391_s7 + $0x18] sm:$0xff]  ;;  %v402_v54 = vld [vmem:[%s1390_s6 + $0x10] sm:$0xff]  ;;  %v364_v57 = vld [vmem:[%s1388_s4 + $0x8] sm:$0xff] }
  0x28   : > { %497 = vmatpush.msra.mxu2 %v482_v32  ;;  %424 = vmatpush.msra.mxu1 %v1156_v34  ;;  %v477_v52 = vld [vmem:[%s1389_s5 + $0x18] sm:$0xff]  ;;  %v512_v55 = vld [vmem:[%s1391_s7 + $0x10] sm:$0xff]  ;;  %v401_v58 = vld [vmem:[%s1390_s6 + $0x8] sm:$0xff] }
  0x29   : > { %534 = vmatpush.msra.mxu3 %v517_v35  ;;  %388 = vmatpush.msra.mxu0 %v1169_v37  ;;  %v476_v56 = vld [vmem:[%s1389_s5 + $0x10] sm:$0xff]  ;;  %v511_v59 = vld [vmem:[%s1391_s7 + $0x8] sm:$0xff]  ;;  %v363_v61 = vld [vmem:[%s1388_s4] sm:$0xff] }
  0x2a   : > { %498 = vmatpush.msra.mxu2 %v481_v36  ;;  %425 = vmatpush.msra.mxu1 %v1174_v38  ;;  %v475_v60 = vld [vmem:[%s1389_s5 + $0x8] sm:$0xff]  ;;  %v400_v62 = vld [vmem:[%s1390_s6] sm:$0xff] }
  0x2b   : > { %535 = vmatpush.msra.mxu3 %v516_v39  ;;  %389 = vmatpush.msra.mxu0 %v1187_v41  ;;  %v510_v63 = vld [vmem:[%s1391_s7] sm:$0xff] }
  0x2c   : > { %499 = vmatpush.msra.mxu2 %v480_v40  ;;  %426 = vmatpush.msra.mxu1 %v1192_v42  ;;  %v362_v0 = vld [vmem:[%s327_s11] sm:$0xff] }
  0x2d   : > { %536 = vmatpush.msra.mxu3 %v515_v43  ;;  %390 = vmatpush.msra.mxu0 %v1205_v45  ;;  %v399_v3 = vld [vmem:[%s335_s17] sm:$0xff] }
  0x2e   : > { %500 = vmatpush.msra.mxu2 %v479_v44  ;;  %427 = vmatpush.msra.mxu1 %v1210_v46  ;;  %v474_v6 = vld [vmem:[%s1389_s5] sm:$0xff] }
  0x2f   : > { %537 = vmatpush.msra.mxu3 %v514_v47  ;;  %391 = vmatpush.msra.mxu0 %v1223_v49 }
  0x30   : > { %501 = vmatpush.msra.mxu2 %v478_v48  ;;  %428 = vmatpush.msra.mxu1 %v1228_v50 }
  0x31   : > { %538 = vmatpush.msra.mxu3 %v513_v51  ;;  %392 = vmatpush.msra.mxu0 %v365_v53 }
  0x32   : > { %502 = vmatpush.msra.mxu2 %v477_v52  ;;  %429 = vmatpush.msra.mxu1 %v402_v54 }
  0x33   : > { %539 = vmatpush.msra.mxu3 %v512_v55  ;;  %393 = vmatpush.msra.mxu0 %v364_v57 }
  0x34   : > { %503 = vmatpush.msra.mxu2 %v476_v56  ;;  %430 = vmatpush.msra.mxu1 %v401_v58 }
  0x35   : > { %540 = vmatpush.msra.mxu3 %v511_v59  ;;  %394 = vmatpush.msra.mxu0 %v363_v61 }
  0x36   : > { %504 = vmatpush.msra.mxu2 %v475_v60  ;;  %431 = vmatpush.msra.mxu1 %v400_v62 }
  0x37   : > { %541 = vmatpush.msra.mxu3 %v510_v63  ;;  %395 = vmatmul.f32.vlgmr.msra.gmra.mxu0 %v362_v0 }
  0x38   : > { %432 = vmatmul.f32.vlgmr.msra.gmra.mxu1 %v399_v3  ;;  %542 = vmatmul.f32.vlgmr.msra.gmra.mxu3 %v399_v3 }
  0x39   : > { %569 = vmatpush.msrb.mxu0 %v1009_v1  ;;  %590 = vmatpush.msrb.mxu1 %v1014_v2  ;;  %v568_v1 = vld [vmem:[%s331_s14] sm:$0xff] }
  0x3a   : > { %505 = vmatpush.msra.mxu2 %v474_v6  ;;  %v589_v2 = vld [vmem:[%s339_s20] sm:$0xff] }
  0x3b   : > { %506 = vmatmul.f32.vlgmr.msra.gmra.mxu2 %v362_v0  ;;  %570 = vmatpush.msrb.mxu0 %v1024_v4  ;;  %v351_v4 = vlaneseq }
  0x3c   : > { %591 = vmatpush.msrb.mxu1 %v1029_v5 }
  0x3d   : > { %571 = vmatpush.msrb.mxu0 %v1040_v8  ;;  %v352_v5 = vshrl.u32 %v351_v4, 7 }
  0x3e   : > { %592 = vmatpush.msrb.mxu1 %v1045_v9 }
  0x3f   : > { %572 = vmatpush.msrb.mxu0 %v1058_v12  ;;  %v1323_v12 = vadd.s32 %v353_v7, %v352_v5 }
  0x40   : > { %593 = vmatpush.msrb.mxu1 %v1063_v13  ;;  %v1325_v13 = vand.u32 127, %v351_v4 }
  0x41   : > { %573 = vmatpush.msrb.mxu0 %v1079_v17  ;;  %vm358_vm2 = vcmp.ge.s32.totalorder %v1323_v12, 12 }
  0x42   : > { %594 = vmatpush.msrb.mxu1 %v1084_v18  ;;  %vm359_vm3 = vcmp.ge.s32.totalorder %v1325_v13, 12  ;;  %vm357_vm6 = vcmp.eq.s32.totalorder %v1323_v12, %v1325_v13 }
  0x43   : > { %574 = vmatpush.msrb.mxu0 %v1097_v21  ;;  %vm1333_vm4 = vmor %vm358_vm2, %vm359_vm3 }
  0x44   : > { %595 = vmatpush.msrb.mxu1 %v1102_v22  ;;  %vm1348_vm7 = vmor %vm1333_vm4, %vm357_vm6 }
  0x45   : > { %575 = vmatpush.msrb.mxu0 %v1115_v25 }
  0x46   : > { %596 = vmatpush.msrb.mxu1 %v1120_v26 }
  0x47   : > { %576 = vmatpush.msrb.mxu0 %v1133_v29 }
  0x48   : > { %597 = vmatpush.msrb.mxu1 %v1138_v30 }
  0x49   : > { %577 = vmatpush.msrb.mxu0 %v1151_v33 }
  0x4a   : > { %598 = vmatpush.msrb.mxu1 %v1156_v34 }
  0x4b   : > { %578 = vmatpush.msrb.mxu0 %v1169_v37 }
  0x4c   : > { %599 = vmatpush.msrb.mxu1 %v1174_v38 }
  0x4d   : > { %579 = vmatpush.msrb.mxu0 %v1187_v41 }
  0x4e   : > { %600 = vmatpush.msrb.mxu1 %v1192_v42 }
  0x4f   : > { %580 = vmatpush.msrb.mxu0 %v1205_v45 }
  0x50   : > { %601 = vmatpush.msrb.mxu1 %v1210_v46 }
  0x51   : > { %581 = vmatpush.msrb.mxu0 %v1223_v49 }
  0x52   : > { %602 = vmatpush.msrb.mxu1 %v1228_v50 }
  0x53   : > { %582 = vmatpush.msrb.mxu0 %v365_v53 }
  0x54   : > { %603 = vmatpush.msrb.mxu1 %v402_v54 }
  0x55   : > { %583 = vmatpush.msrb.mxu0 %v364_v57 }
  0x56   : > { %604 = vmatpush.msrb.mxu1 %v401_v58 }
  0x57   : > { %584 = vmatpush.msrb.mxu0 %v363_v61 }
  0x58   : > { %605 = vmatpush.msrb.mxu1 %v400_v62  ;;  %585 = vmatmul.f32.vlgmr.msrb.gmra.mxu0 %v568_v1 }
  0x59   : > { %606 = vmatmul.f32.vlgmr.msrb.gmra.mxu1 %v589_v2 }
  0xb4   : > { %v396_v8 = vpop.f32.mrf.mxu0 }
  0xb5   : > { %v833_v9 = vadd.f32 -20.0, %v396_v8  ;;  %v433_v10 = vpop.f32.mrf.mxu1 }
  0xb6   : > { %v834_v11 = vadd.f32 -20.0, %v433_v10  ;;  %v436_v24 = vsub.f32 %v433_v10, %v396_v8 }
  0xb7   : > { %v438_v14 = vmul.f32 1.442695, %v833_v9 }
  0xb8   : > { %v442_v15 = vmul.f32 1.442695, %v834_v11 }
  0xb9   : > { %864 = vpow2.f32 %v438_v14 }
  0xba   : > { %866 = vpow2.f32 %v442_v15 }
  0xbb   : > { %v543_v16 = vpop.f32.mrf.mxu3 }
  0xbc   : > { %v836_v17 = vadd.f32 -20.0, %v543_v16 }
  0xbe   : > { %v552_v19 = vmul.f32 1.442695, %v836_v17  ;;  %v507_v20 = vpop.f32.mrf.mxu2 }
  0xbf   : > { %v865_v21 = vpop.eup %864  ;;  %v835_v22 = vadd.f32 -20.0, %v507_v20  ;;  %v546_v34 = vsub.f32 %v543_v16, %v507_v20 }
  0xc0   : > { %v867_v23 = vpop.eup %866  ;;  %868 = vpow2.f32 %v552_v19  ;;  %v440_v25 = vsel %vm1333_vm4, 0.0, %v865_v21 }
  0xc1   : > { %v548_v26 = vmul.f32 1.442695, %v835_v22  ;;  %v444_v27 = vsel %vm1333_vm4, 0.0, %v867_v23  ;;  %v447_v28 = vsel %vm446_vm5, %v440_v25, 0.0 }
  0xc2   : > { %v450_v29 = vsel %vm446_vm5, %v444_v27, 0.0  ;;  %448 = vadd.xlane.f32.xlu1 %v447_v28  ;;  %v445_v30 = vmul.f32 %v444_v27, %v436_v24  ;;  %v456_v47 = vrot.slane %v447_v28, 4  ;;  %v682_v27 = vld [vmem:[#allocation2] sm:$0x1] }
  0xc3   : > { %870 = vpow2.f32 %v548_v26  ;;  %451 = vadd.xlane.f32.xlu0 %v450_v29  ;;  %v462_v49 = vrot.slane %v450_v29, 4 }
  0xc4   : > { %v453_v31 = vsel %vm446_vm5, %v445_v30, 0.0  ;;  %v457_v51 = vadd.f32 %v456_v47, %v447_v28 }
  0xc5   : > { %454 = vadd.xlane.f32.xlu2 %v453_v31  ;;  %v468_v50 = vrot.slane %v453_v31, 4  ;;  %v463_v52 = vadd.f32 %v462_v49, %v450_v29 }
  0xc6   : > { %v869_v33 = vpop.eup %868  ;;  %v458_v57 = vrot.slane %v457_v51, 2 }
  0xc7   : > { %v554_v35 = vsel %vm1348_vm7, 0.0, %v869_v33  ;;  %v469_v55 = vadd.f32 %v468_v50, %v453_v31  ;;  %v464_v59 = vrot.slane %v463_v52, 2  ;;  %v686_v31 = vld [vmem:[#allocation3] sm:$0x1] }
  0xc8   : > { %v559_v36 = vsel %vm446_vm5, %v554_v35, 0.0  ;;  %v563_v37 = vmul.f32 %v554_v35, %v546_v34  ;;  %v459_v1 = vadd.f32 %v458_v57, %v457_v51 }
  0xc9   : > { %v871_v38 = vpop.eup %870  ;;  %v470_v3 = vrot.slane %v469_v55, 2  ;;  %v465_v5 = vadd.f32 %v464_v59, %v463_v52 }
  0xca   : > { %v550_v39 = vsel %vm1348_vm7, 0.0, %v871_v38  ;;  %v564_v41 = vsel %vm446_vm5, %v563_v37, 0.0  ;;  %v460_v15 = vrot.slane %v459_v1, 1 }
  0xcb   : > { %560 = vadd.xlane.f32.xlu0 %v559_v36  ;;  %v555_v40 = vsel %vm446_vm5, %v550_v39, 0.0  ;;  %v471_v10 = vadd.f32 %v470_v3, %v469_v55  ;;  %v466_v17 = vrot.slane %v465_v5, 1  ;;  %v689_v36 = vld [vmem:[#allocation4] sm:$0x1] }
  0xcc   : > { %556 = vadd.xlane.f32.xlu1 %v555_v40  ;;  %v461_v24 = vadd.f32 %v460_v15, %v459_v1 }
  0xcd   : > { %565 = vadd.xlane.f32.xlu2 %v564_v41  ;;  %v472_v21 = vrot.slane %v471_v10, 1  ;;  %v467_v26 = vadd.f32 %v466_v17, %v465_v5 }
  0xcf   : > { %v473_v32 = vadd.f32 %v472_v21, %v471_v10 }
  0xd5   : > { %v586_v42 = vpop.f32.mrf.mxu0 }
  0xd6   : > { %v837_v43 = vadd.f32 -20.0, %v586_v42  ;;  %v607_v44 = vpop.f32.mrf.mxu1 }
  0xd7   : > { %v838_v45 = vadd.f32 -20.0, %v607_v44  ;;  %v610_v53 = vsub.f32 %v607_v44, %v586_v42 }
  0xd8   : > { %v612_v46 = vmul.f32 1.442695, %v837_v43 }
  0xd9   : > { %v616_v48 = vmul.f32 1.442695, %v838_v45 }
  0xda   : > { %872 = vpow2.f32 %v612_v46 }
  0xdb   : > { %874 = vpow2.f32 %v616_v48 }
  0xe0   : > { %v873_v54 = vpop.eup %872 }
  0xe1   : > { %v875_v56 = vpop.eup %874  ;;  %v614_v58 = vsel %vm1348_vm7, 0.0, %v873_v54 }
  0xe2   : > { %v620_v60 = vsel %vm446_vm5, %v614_v58, 0.0  ;;  %v618_v61 = vsel %vm1348_vm7, 0.0, %v875_v56 }
  0xe3   : > { %v621_v62 = vrot.slane %v620_v60, 4  ;;  %v619_v63 = vmul.f32 %v618_v61, %v610_v53  ;;  %v628_v0 = vsel %vm446_vm5, %v618_v61, 0.0 }
  0xe4   : > { %v629_v6 = vrot.slane %v628_v0, 4 }
  0xe5   : > { %v622_v2 = vadd.f32 %v621_v62, %v620_v60  ;;  %v636_v4 = vsel %vm446_vm5, %v619_v63, 0.0 }
  0xe6   : > { %v630_v7 = vadd.f32 %v629_v6, %v628_v0  ;;  %v637_v8 = vrot.slane %v636_v4, 4 }
  0xe7   : > { %v623_v9 = vrot.slane %v622_v2, 2 }
  0xe8   : > { %v631_v11 = vrot.slane %v630_v7, 2  ;;  %v638_v14 = vadd.f32 %v637_v8, %v636_v4 }
  0xe9   : > { %v624_v16 = vadd.f32 %v623_v9, %v622_v2 }
  0xea   : > { %v632_v18 = vadd.f32 %v631_v11, %v630_v7  ;;  %v639_v19 = vrot.slane %v638_v14, 2  ;;  %v666_v11 = vld [vmem:[#allocation5] sm:$0x1] }
  0xeb   : > { %v625_v20 = vrot.slane %v624_v16, 1 }
  0xec   : > { %v633_v22 = vrot.slane %v632_v18, 1  ;;  %v640_v23 = vadd.f32 %v639_v19, %v638_v14 }
  0xed   : > { %v626_v25 = vadd.f32 %v625_v20, %v624_v16 }
  0xee   : > { %v634_v28 = vadd.f32 %v633_v22, %v632_v18  ;;  %v641_v29 = vrot.slane %v640_v23, 1 }
  0xef   : > { %v627_v30 = vadd.f32 %v626_v25, %v461_v24 }
  0xf0   : > { %v635_v33 = vadd.f32 %v634_v28, %v467_v26  ;;  %v642_v34 = vadd.f32 %v641_v29, %v640_v23 }
  0xf1   : > { %v683_v35 = vadd.f32 %v682_v27, %v627_v30 }
  0xf2   : > { %v643_v37 = vadd.f32 %v642_v34, %v473_v32  ;;  %v687_v38 = vadd.f32 %v686_v31, %v635_v33 }
  0xf3   : > { %685 = vst.msk [vmem:[#allocation2] sm:$0x1] %vm684_vm8, %v683_v35 }
  0xf4   : > { %688 = vst.msk [vmem:[#allocation3] sm:$0x1] %vm684_vm8, %v687_v38  ;;  %v690_v39 = vadd.f32 %v689_v36, %v643_v37 }
  0xf6   : > { %691 = vst.msk [vmem:[#allocation4] sm:$0x1] %vm684_vm8, %v690_v39 }
 0x135   : > { %v449_v40 = vpop.xlane.xlu1 %448 }
 0x136   : > { %v452_v41 = vpop.xlane.xlu0 %451 }
 0x138   : > { %v455_v46 = vpop.xlane.xlu2 %454 }
 0x13e   : > { %v561_v42 = vpop.xlane.xlu0 %560 }
 0x13f   : > { %v562_v43 = vadd.f32 %v561_v42, %v452_v41  ;;  %v557_v44 = vpop.xlane.xlu1 %556 }
 0x140   : > { %v558_v45 = vadd.f32 %v557_v44, %v449_v40  ;;  %v566_v55 = vpop.xlane.xlu2 %565 }
 0x141   : > { %876 = vrcp.f32 %v562_v43  ;;  %v655_v52 = vand.u32 2147483648, %v562_v43  ;;  %v653_v54 = vand.u32 2147483647, %v562_v43  ;;  %vm649_vm10 = vweird.f32 %v562_v43 }
 0x142   : > { %878 = vlog2.f32 %v562_v43  ;;  %v567_v60 = vadd.f32 %v566_v55, %v455_v46 }
 0x143   : > { %880 = vlog2.f32 %v558_v45  ;;  %v656_v59 = vor.u32 1.1754944e-38, %v655_v52  ;;  %vm654_vm12 = vcmp.eq.f32.partialorder %v653_v54, 8.507059e+37 }
 0x147   : > { %v877_v47 = vpop.eup %876 }
 0x148   : > { %v645_v48 = vmul.f32 %v877_v47, %v562_v43  ;;  %v879_v49 = vpop.eup %878  ;;  %vm650_vm9 = vweird.f32 %v877_v47 }
 0x149   : > { %v881_v51 = vpop.eup %880  ;;  %v662_v56 = vmul.f32 0.6931472, %v879_v49  ;;  %vm651_vm11 = vmor %vm649_vm10, %vm650_vm9 }
 0x14a   : > { %v646_v50 = vsub.f32 1.0, %v645_v48  ;;  %v660_v57 = vmul.f32 0.6931472, %v881_v51 }
 0x14c   : > { %v647_v53 = vmul.f32 %v877_v47, %v646_v50  ;;  %v663_v63 = vsub.f32 %v660_v57, %v662_v56 }
 0x14e   : > { %v648_v58 = vadd.f32 %v877_v47, %v647_v53 }
 0x150   : > { %v652_v61 = vsel %vm651_vm11, %v877_v47, %v648_v58 }
 0x151   : > { %v657_v62 = vsel %vm654_vm12, %v656_v59, %v652_v61 }
 0x152   : > { %v658_v0 = vmul.f32 %v657_v62, %v567_v60 }
 0x154   : > { %v664_v3 = vadd.f32 %v663_v63, %v658_v0 }
 0x156   : > { %v665_v6 = vsel %vm358_vm2, 0.0, %v664_v3 }
 0x157   : > { %v668_v1 = vsel %vm667_vm13, %v665_v6, 0.0 }
 0x158   : > { %669 = vadd.xlane.f32.xlu0 %v668_v1 }
 0x1cb   : > { %v670_v2 = vpop.xlane.xlu0 %669 }
 0x1cc   : > { %v671_v4 = vrot.slane %v670_v2, 4 }
 0x1ce   : > { %v672_v5 = vadd.f32 %v671_v4, %v670_v2 }
 0x1d0   : > { %v673_v7 = vrot.slane %v672_v5, 2 }
 0x1d2   : > { %v674_v8 = vadd.f32 %v673_v7, %v672_v5 }
 0x1d4   : > { %v675_v9 = vrot.slane %v674_v8, 1 }
 0x1d6   : > { %v676_v10 = vadd.f32 %v675_v9, %v674_v8 }
 0x1d8   : > { %844 = vpush %v676_v10 }
 0x209   : > { %s845_s30 = spop %844  ;;  %695 = sbr.rel (%p839_p5) target bundleno = 738 (0x2e2), region = 60 }
 0x20a   : > { %v678_v14 = vstv %s845_s30 }
 0x20b   : > { %v679_v15 = vadd.f32 %v678_v14, %v666_v11 }
 0x20d   : > { %681 = vst.msk [vmem:[#allocation5] sm:$0x1] %vm680_vm14, %v679_v15 }
 0x20e   : > { %v696_v12 = vld [vmem:[#allocation3] sm:$0x1]  ;;  %v713_v16 = vld [vmem:[#allocation2] sm:$0x1]  ;;  %v697_v29 = vld [vmem:[#allocation4] sm:$0x1] }
 0x20f   : > { %882 = vrcp.f32 %v696_v12  ;;  %v709_v21 = vand.u32 2147483648, %v696_v12  ;;  %vm703_vm15 = vweird.f32 %v696_v12  ;;  %v707_v23 = vand.u32 2147483647, %v696_v12 }
 0x210   : > { %884 = vlog2.f32 %v713_v16 }
 0x211   : > { %886 = vlog2.f32 %v696_v12  ;;  %v710_v27 = vor.u32 1.1754944e-38, %v709_v21  ;;  %vm708_vm2 = vcmp.eq.f32.partialorder %v707_v23, 8.507059e+37 }
 0x214   : > { %v732_v44 = vld [vmem:[#allocation5] sm:$0x1] }
 0x215   : > { %v883_v17 = vpop.eup %882  ;;  %v733_v45 = vmul.f32 0.5, %v732_v44 }
 0x216   : > { %v885_v18 = vpop.eup %884  ;;  %v699_v19 = vmul.f32 %v883_v17, %v696_v12  ;;  %vm704_vm0 = vweird.f32 %v883_v17 }
 0x217   : > { %v887_v20 = vpop.eup %886  ;;  %v715_v25 = vmul.f32 0.6931472, %v885_v18  ;;  %vm705_vm1 = vmor %vm703_vm15, %vm704_vm0 }
 0x218   : > { %v700_v22 = vsub.f32 1.0, %v699_v19  ;;  %v717_v26 = vmul.f32 0.6931472, %v887_v20 }
 0x21a   : > { %v701_v24 = vmul.f32 %v883_v17, %v700_v22  ;;  %v718_v31 = vsub.f32 %v715_v25, %v717_v26 }
 0x21c   : > { %v702_v28 = vadd.f32 %v883_v17, %v701_v24 }
 0x21e   : > { %v706_v30 = vsel %vm705_vm1, %v883_v17, %v702_v28 }
 0x21f   : > { %v711_v32 = vsel %vm708_vm2, %v710_v27, %v706_v30 }
 0x220   : > { %v712_v33 = vmul.f32 %v711_v32, %v697_v29 }
 0x222   : > { %v719_v34 = vadd.f32 %v718_v31, %v712_v33 }
 0x224   : > { %v720_v35 = vsel %vm359_vm3, 0.0, %v719_v34 }
 0x225   : > { %v721_v36 = vsel %vm684_vm8, %v720_v35, 0.0 }
 0x226   : > { %722 = vadd.xlane.f32.xlu0 %v721_v36 }
 0x299   : > { %v723_v37 = vpop.xlane.xlu0 %722 }
 0x29a   : > { %v724_v38 = vrot.slane %v723_v37, 4 }
 0x29c   : > { %v725_v39 = vadd.f32 %v724_v38, %v723_v37 }
 0x29e   : > { %v726_v40 = vrot.slane %v725_v39, 2 }
 0x2a0   : > { %v727_v41 = vadd.f32 %v726_v40, %v725_v39 }
 0x2a2   : > { %v728_v42 = vrot.slane %v727_v41, 1 }
 0x2a4   : > { %v729_v43 = vadd.f32 %v728_v42, %v727_v41 }
 0x2a6   : > { %846 = vpush %v729_v43 }
 0x2d7   : > { %s847_s14 = spop %846 }
 0x2d8   : > { %v731_v46 = vstv %s847_s14 }
 0x2d9   : > { %v734_v47 = vmul.f32 0.5, %v731_v46 }
 0x2db   : > { %v735_v48 = vadd.f32 %v734_v47, %v733_v45 }
 0x2dd   : > { %v736_v49 = vmul.f32 0.1, %v735_v48 }
 0x2df   : > { %v737_v13 = vmul.f32 0.0034722222, %v736_v49 }
 0x2e1   : > { %738 = vst.msk [vmem:[#allocation6] sm:$0x1] %vm680_vm14, %v737_v13 }
 0x2e2 PF: > { %p852_p6 = scmp.eq.s32.totalorder %s981_s28, 1  ;;  %s929_s20 = smov [#allocation6]  }
 0x2e3   : > { %s745_s21 = sshll.u32 %s929_s20, 4  ;;  %s747_s24 = sshll.u32 %s1392_s8, 4  ;;  %s746_s21 = int_to_ptr.vmem [resolvable:$true] %s745_s21  ;;  %s748_s24 = int_to_ptr.hbm [resolvable:$true] %s747_s24 }
 0x2e4   : > { %849 = dma.vmem_to_hbm [thread:$0]  (%p852_p6), %s746_s21, 16, %s748_s24, [#allocation7]  }
 0x2e5   : > { %921 = dma.done.wait (%p852_p6), [#allocation7], 16  }
 0x2e6   : > { %923 = vsyncadd (%p852_p6), [#allocation7], 4294967280 }
 0x2e7 PF: > { %s19_s27 = sadd.s32 1, %s926_s27  }
 0x2e8   : > { %p16_p7 = scmp.ge.s32.totalorder %s19_s27, 4  }
 0x2ea   :  { %18 = sbr.rel (!%p16_p7) target bundleno = 1 (0x1), region = 96 }
 0x2ef   :  { %761 = vsyncpa [#allocation7], 1 }
 0x2f0   :  { %763 = vsyncpa [#allocation7 + $0x1], 1 }

</bundles_post_ra>
